<compile_context>
chip_gen: v5e
topology: v5e:2x2
jax: 0.10.0
libtpu: 0.0.40
codegen_flags: <defaults>
</compile_context>

<pallas_src>
import functools

import jax
import jax.numpy as jnp
from jax.experimental import pallas as pl
from jax.experimental.pallas import tpu as pltpu


def _round_up(x: int, m: int) -> int:
    return (x + m - 1) // m * m


def mlp_kernel(x_ref, w1_ref, b1_ref, w2_ref, b2_ref, o_ref):
    # Hidden layer: x @ W1 (MXU, bf16 operands, f32 accumulate) + bias + ReLU (f32 VPU).
    h = jnp.dot(x_ref[...], w1_ref[...], preferred_element_type=jnp.float32)
    h = jnp.maximum(h + b1_ref[...], 0.0)
    # Output layer: h @ W2 + b2 (again bf16 operands into the MXU, f32 accumulate).
    out = jnp.dot(h.astype(w2_ref.dtype), w2_ref[...],
                  preferred_element_type=jnp.float32)
    o_ref[...] = (out + b2_ref[...]).astype(o_ref.dtype)


@functools.partial(jax.jit, static_argnames=("tile_m",))
def network_forward(s, w1, b1, w2, b2, *, tile_m: int = 512):
    """Forward pass of Network (Flatten -> Linear -> ReLU -> Linear).

    s : (batch, *state_shape)           -> flattened to (batch, input_size)
    w1: (input_size, hidden)  b1: (1, hidden)
    w2: (hidden, output)      b2: (1, output)
    returns (batch, output) float32
    """
    batch = s.shape[0]
    x = s.reshape(batch, -1)
    input_size = x.shape[1]
    hidden = w1.shape[1]
    out_size = w2.shape[1]

    # --- Padded / tiled shapes --------------------------------------------
    tm = min(tile_m, _round_up(batch, 8))        # batch tile (>= 8 sublanes)
    batch_p = _round_up(batch, tm)               # pad batch to a whole number of tiles
    hid_p = _round_up(hidden, 128)               # lane-dense hidden
    out_p = _round_up(out_size, 128)             # lane-dense output stores

    wdt = jnp.bfloat16                           # MXU operand dtype

    x_p = jnp.pad(x.astype(wdt), ((0, batch_p - batch), (0, 0)))
    w1_p = jnp.pad(w1.astype(wdt), ((0, 0), (0, hid_p - hidden)))
    b1_p = jnp.pad(b1.astype(jnp.float32), ((0, 0), (0, hid_p - hidden)))
    w2_p = jnp.pad(w2.astype(wdt), ((0, hid_p - hidden), (0, out_p - out_size)))
    b2_p = jnp.pad(b2.astype(jnp.float32), ((0, 0), (0, out_p - out_size)))

    grid = (batch_p // tm,)

    # --- VMEM budget (resident weights + double-buffered x/out + intermediates)
    resident = (w1_p.size * 2 + w2_p.size * 2 + b1_p.size * 4 + b2_p.size * 4)
    per_step = 2 * (tm * input_size * 2 + tm * out_p * 4)   # double-buffered in/out tiles
    interm = tm * hid_p * 4 + tm * out_p * 4                # h (f32) + out accumulate
    vmem_limit = min(max(int(1.5 * (resident + per_step + interm)),
                         16 * 1024 * 1024),
                     60 * 1024 * 1024)

    out_padded = pl.pallas_call(
        mlp_kernel,
        out_shape=jax.ShapeDtypeStruct((batch_p, out_p), jnp.float32),
        grid_spec=pl.GridSpec(
            grid=grid,
            in_specs=[
                pl.BlockSpec((tm, input_size), lambda i: (i, 0)),   # x tile walks batch
                pl.BlockSpec((input_size, hid_p), lambda i: (0, 0)),  # W1 resident
                pl.BlockSpec((1, hid_p), lambda i: (0, 0)),           # b1 resident
                pl.BlockSpec((hid_p, out_p), lambda i: (0, 0)),       # W2 resident
                pl.BlockSpec((1, out_p), lambda i: (0, 0)),           # b2 resident
            ],
            out_specs=pl.BlockSpec((tm, out_p), lambda i: (i, 0)),
        ),
        compiler_params=pltpu.CompilerParams(
            dimension_semantics=("parallel",),     # batch tiles -> both TCs on v7x
            vmem_limit_bytes=vmem_limit,
        ),
    )(x_p, w1_p, b1_p, w2_p, b2_p)

    return out_padded[:batch, :out_size]


def init_params(key, input_size, hidden_size, output_size):
    """PyTorch-style uniform(-1/sqrt(fan_in), 1/sqrt(fan_in)) init (f32 master copy)."""
    k1, k2, k3, k4 = jax.random.split(key, 4)
    bound1 = 1.0 / jnp.sqrt(jnp.float32(input_size))
    bound2 = 1.0 / jnp.sqrt(jnp.float32(hidden_size))
    w1 = jax.random.uniform(k1, (input_size, hidden_size), jnp.float32, -bound1, bound1)
    b1 = jax.random.uniform(k2, (1, hidden_size), jnp.float32, -bound1, bound1)
    w2 = jax.random.uniform(k3, (hidden_size, output_size), jnp.float32, -bound2, bound2)
    b2 = jax.random.uniform(k4, (1, output_size), jnp.float32, -bound2, bound2)
    return w1, b1, w2, b2


if __name__ == "__main__":
    # Small shapes: batch=2, state_shape=(4, 8) -> input_size=32, hidden=32, output=8
    batch, input_size, hidden_size, output_size = 2, 32, 32, 8

    key = jax.random.PRNGKey(0)
    ks, kp = jax.random.split(key)
    s = jax.random.normal(ks, (batch, 4, 8), jnp.float32)   # (batch, *state_shape)
    w1, b1, w2, b2 = init_params(kp, input_size, hidden_size, output_size)

    out = network_forward(s, w1, b1, w2, b2)
    out = jax.block_until_ready(out)

    # Reference in plain JAX using the same bf16-rounded MXU operands + f32 accumulation.
    f32 = jnp.float32
    xb = s.reshape(batch, -1).astype(jnp.bfloat16).astype(f32)
    w1b = w1.astype(jnp.bfloat16).astype(f32)
    w2b = w2.astype(jnp.bfloat16).astype(f32)
    h_ref = jnp.maximum(xb @ w1b + b1, 0.0)
    ref = h_ref.astype(jnp.bfloat16).astype(f32) @ w2b + b2

    assert out.shape == (batch, output_size)
    assert jnp.allclose(out, ref, atol=1e-4, rtol=1e-4), "mismatch vs bf16 reference"
    # Sanity vs the pure-f32 PyTorch-equivalent math (loose tol for bf16 operand rounding).
    ref_f32 = jnp.maximum(s.reshape(batch, -1) @ w1 + b1, 0.0) @ w2 + b2
    assert jnp.allclose(out, ref_f32, atol=5e-2, rtol=5e-2), "mismatch vs f32 reference"

    print("KERNEL_OK")
</pallas_src>

<mosaic_0001>
module attributes {stable_mosaic.version = 11 : i64} {
  func.func @mlp_kernel(%arg0: i32, %arg1: memref<8x32xbf16, #tpu.memory_space<vmem>>, %arg2: memref<32x128xbf16, #tpu.memory_space<vmem>>, %arg3: memref<1x128xf32, #tpu.memory_space<vmem>>, %arg4: memref<128x128xbf16, #tpu.memory_space<vmem>>, %arg5: memref<1x128xf32, #tpu.memory_space<vmem>>, %arg6: memref<8x128xf32, #tpu.memory_space<vmem>>) attributes {dimension_semantics = [#tpu.dimension_semantics<parallel>], iteration_bounds = array<i64: 1>, scalar_prefetch = 0 : i64, scratch_operands = 0 : i64, tpu.core_type = #tpu.core_type<tc>, window_params = [{transform_indices = @transform_0, window_bounds = array<i64: 8, 32>}, {pipeline_mode = #tpu.pipeline_mode<synchronous>, transform_indices = @transform_1, window_bounds = array<i64: 32, 128>}, {pipeline_mode = #tpu.pipeline_mode<synchronous>, transform_indices = @transform_2, window_bounds = array<i64: 1, 128>}, {pipeline_mode = #tpu.pipeline_mode<synchronous>, transform_indices = @transform_3, window_bounds = array<i64: 128, 128>}, {pipeline_mode = #tpu.pipeline_mode<synchronous>, transform_indices = @transform_4, window_bounds = array<i64: 1, 128>}, {transform_indices = @transform_5, window_bounds = array<i64: 8, 128>}]} {
    %c0 = arith.constant 0 : index
    %c0_0 = arith.constant 0 : index
    %0 = vector.load %arg1[%c0, %c0_0] : memref<8x32xbf16, #tpu.memory_space<vmem>>, vector<8x32xbf16>
    %c0_1 = arith.constant 0 : index
    %c0_2 = arith.constant 0 : index
    %1 = vector.load %arg2[%c0_1, %c0_2] : memref<32x128xbf16, #tpu.memory_space<vmem>>, vector<32x128xbf16>
    %cst = arith.constant dense<0.000000e+00> : vector<8x128xf32>
    %2 = tpu.matmul %0, %1, %cst {dimension_numbers = #tpu.dot_dimension_numbers<[1], [0], [0], [1], [0, 0, 1, 1], [], []>} : vector<8x32xbf16>, vector<32x128xbf16>, vector<8x128xf32> -> vector<8x128xf32>
    %c0_3 = arith.constant 0 : index
    %c0_4 = arith.constant 0 : index
    %3 = vector.load %arg3[%c0_3, %c0_4] : memref<1x128xf32, #tpu.memory_space<vmem>>, vector<1x128xf32>
    %4 = vector.broadcast %3 : vector<1x128xf32> to vector<8x128xf32>
    %5 = arith.addf %2, %4 : vector<8x128xf32>
    %cst_5 = arith.constant 0.000000e+00 : f32
    %6 = vector.broadcast %cst_5 : f32 to vector<8x128xf32>
    %7 = arith.maximumf %5, %6 : vector<8x128xf32>
    %8 = arith.truncf %7 : vector<8x128xf32> to vector<8x128xbf16>
    %c0_6 = arith.constant 0 : index
    %c0_7 = arith.constant 0 : index
    %9 = vector.load %arg4[%c0_6, %c0_7] : memref<128x128xbf16, #tpu.memory_space<vmem>>, vector<128x128xbf16>
    %cst_8 = arith.constant dense<0.000000e+00> : vector<8x128xf32>
    %10 = tpu.matmul %8, %9, %cst_8 {dimension_numbers = #tpu.dot_dimension_numbers<[1], [0], [0], [1], [0, 0, 1, 1], [], []>} : vector<8x128xbf16>, vector<128x128xbf16>, vector<8x128xf32> -> vector<8x128xf32>
    %c0_9 = arith.constant 0 : index
    %c0_10 = arith.constant 0 : index
    %11 = vector.load %arg5[%c0_9, %c0_10] : memref<1x128xf32, #tpu.memory_space<vmem>>, vector<1x128xf32>
    %12 = vector.broadcast %11 : vector<1x128xf32> to vector<8x128xf32>
    %13 = arith.addf %10, %12 : vector<8x128xf32>
    %c0_11 = arith.constant 0 : index
    %c0_12 = arith.constant 0 : index
    %14 = vector.load %arg6[%c0_11, %c0_12] : memref<8x128xf32, #tpu.memory_space<vmem>>, vector<8x128xf32>
    tpu.vector_store %arg6[%c0_11, %c0_12], %13 {strides = array<i32>} : memref<8x128xf32, #tpu.memory_space<vmem>>, vector<8x128xf32>,
    return
  }
  func.func @transform_0(%arg0: i32) -> (i32, i32) {
    %c0_i32 = arith.constant 0 : i32
    %c0_i32_0 = arith.constant 0 : i32
    return %arg0, %c0_i32 : i32, i32
  }
  func.func @transform_1(%arg0: i32) -> (i32, i32) {
    %c0_i32 = arith.constant 0 : i32
    %c0_i32_0 = arith.constant 0 : i32
    %c0_i32_1 = arith.constant 0 : i32
    return %c0_i32, %c0_i32_0 : i32, i32
  }
  func.func @transform_2(%arg0: i32) -> (i32, i32) {
    %c0_i32 = arith.constant 0 : i32
    %c0_i32_0 = arith.constant 0 : i32
    %c0_i32_1 = arith.constant 0 : i32
    return %c0_i32, %c0_i32_0 : i32, i32
  }
  func.func @transform_3(%arg0: i32) -> (i32, i32) {
    %c0_i32 = arith.constant 0 : i32
    %c0_i32_0 = arith.constant 0 : i32
    %c0_i32_1 = arith.constant 0 : i32
    return %c0_i32, %c0_i32_0 : i32, i32
  }
  func.func @transform_4(%arg0: i32) -> (i32, i32) {
    %c0_i32 = arith.constant 0 : i32
    %c0_i32_0 = arith.constant 0 : i32
    %c0_i32_1 = arith.constant 0 : i32
    return %c0_i32, %c0_i32_0 : i32, i32
  }
  func.func @transform_5(%arg0: i32) -> (i32, i32) {
    %c0_i32 = arith.constant 0 : i32
    %c0_i32_0 = arith.constant 0 : i32
    return %arg0, %c0_i32 : i32, i32
  }
}

</mosaic_0001>

<bundles_post_ra>
// kernel: network_forward.1
= control target key start
LH: loop header
LB: loop body
LE: loop exit
PB: predicated region body
PF: predicated region fallthrough
CT: control target
= control target key end

     0   :  { %vm42_vm0 = vcmask 261120   ;;  %s272_s1 = inlined_call_operand.vmem [shape: bf16[32,128], index: 1, kind: input, shape index: {}]   ;;  %s273_s3 = inlined_call_operand.vmem [shape: bf16[128,128], index: 3, kind: input, shape index: {}]   ;;  %s274_s2 = inlined_call_operand.vmem [shape: f32[1,128], index: 2, kind: input, shape index: {}]   ;;  %s275_s0 = inlined_call_operand.vmem [shape: bf16[8,32], index: 0, kind: input, shape index: {}]   ;;  %s276_s4 = inlined_call_operand.vmem [shape: f32[1,128], index: 4, kind: input, shape index: {}]   ;;  %s277_s5 = inlined_call_operand.vmem [shape: f32[8,128], index: 5, kind: output, shape index: {}]  }
   0x1   :  { %v189_v0 = vld [vmem:[%s272_s1 + $0x8] sm:$0xff]  ;;  %v197_v1 = vld [vmem:[%s273_s3 + $0x38] sm:$0xff]  ;;  %v188_v2 = vld [vmem:[%s272_s1] sm:$0xff] }
   0x2   :  { %52 = vmatpush.bf16.msra.mxu0 %v189_v0  ;;  %129 = vmatpush.bf16.msra.mxu1 %v197_v1  ;;  %v196_v3 = vld [vmem:[%s273_s3 + $0x30] sm:$0xff]  ;;  %v21_v4 = vld [vmem:[%s275_s0] sm:$0xf]  ;;  %v195_v5 = vld [vmem:[%s273_s3 + $0x28] sm:$0xff] }
   0x3   :  { %v194_v6 = vld [vmem:[%s273_s3 + $0x20] sm:$0xff]  ;;  %v193_v7 = vld [vmem:[%s273_s3 + $0x18] sm:$0xff]  ;;  %v192_v8 = vld [vmem:[%s273_s3 + $0x10] sm:$0xff] }
   0x4   :  { %v191_v9 = vld [vmem:[%s273_s3 + $0x8] sm:$0xff]  ;;  %v190_v10 = vld [vmem:[%s273_s3] sm:$0xff] }
   0x5   :  { %v198_v11 = vld [vmem:[%s274_s2] ss:$0 sm:$0xff] }
   0x6   :  { %53 = vmatpush.bf16.msra.mxu0 %v188_v2  ;;  %130 = vmatpush.bf16.msra.mxu1 %v196_v3  ;;  %v199_v17 = vld [vmem:[%s276_s4] ss:$0 sm:$0xff] }
   0x9   :  { %155 = vmatmul.msk.bf16.vlgmr.msra.gmra.mxu0 %vm42_vm0, %v21_v4 }
   0xa   :  { %131 = vmatpush.bf16.msra.mxu1 %v195_v5 }
   0xe   :  { %132 = vmatpush.bf16.msra.mxu1 %v194_v6 }
  0x12   :  { %133 = vmatpush.bf16.msra.mxu1 %v193_v7 }
  0x16   :  { %134 = vmatpush.bf16.msra.mxu1 %v192_v8 }
  0x1a   :  { %135 = vmatpush.bf16.msra.mxu1 %v191_v9 }
  0x1e   :  { %136 = vmatpush.bf16.msra.mxu1 %v190_v10 }
  0x86   :  { %v55_v12 = vpop.f32.mrf.mxu0 }
  0x87   :  { %v56_v13 = vadd.f32 %v198_v11, %v55_v12 }
  0x89   :  { %v59_v14 = vmax.f32 %v56_v13, 0.0 }
  0x8b   :  { %v60_v15 = vpack.c.bf16 %v59_v14, %v59_v14 }
  0x8d   :  { %137 = vmatmul.bf16.vlgmr.msra.gmra.mxu1 %v60_v15 }
  0x8e   :  { %v57_v16 = vpop.f32.mrf.mxu0 }
 0x10a   :  { %v138_v18 = vpop.f32.mrf.mxu1 }
 0x10b   :  { %v139_v19 = vadd.f32 %v199_v17, %v138_v18 }
 0x10d   :  { %142 = vst [vmem:[%s277_s5] sm:$0xff] %v139_v19 }
 0x112   :  { %v140_v20 = vpop.f32.mrf.mxu1 }

</bundles_post_ra>
